<compile_context>
chip_gen: v5e
topology: v5e:2x2
jax: 0.10.0
libtpu: 0.0.40
codegen_flags: <defaults>
</compile_context>

<pallas_src>
import functools

import jax
import jax.numpy as jnp
import numpy as np
from jax import lax
from jax.experimental import pallas as pl
from jax.experimental.pallas import tpu as pltpu


def _round_up(x, m):
    return (x + m - 1) // m * m


def _cdiv(a, b):
    return -(-a // b)


def dcc_loss_kernel(x_ref, lut_ref, tgt_ref, out_ref,
                    m_cc, l_cc, m_ic, l_ic, p_acc, sl1_acc,
                    *, weight, valid_b, valid_c):
    ci = pl.program_id(0)            # class tile (outer, reduction axis)
    bi = pl.program_id(1)            # batch tile (inner; LUT tile stays resident)
    last_ct = pl.num_programs(0) - 1

    tb = x_ref.shape[0]              # static python ints
    tc = lut_ref.shape[1] // 2

    @pl.when(ci == 0)
    def _init():
        neg = jnp.full((tb, 1), -1e30, jnp.float32)
        zero = jnp.zeros((tb, 1), jnp.float32)
        m_cc[bi] = neg
        m_ic[bi] = neg
        l_cc[bi] = zero
        l_ic[bi] = zero
        p_acc[bi] = zero
        sl1_acc[bi] = zero

    x = x_ref[...]                   # (TB, F)   bf16, `scalar` already folded in
    lut = lut_ref[...]               # (F, 2*TC) bf16: [ccc cols | icc cols]

    # Single fused MXU matmul for both LUT halves, f32 accumulation.
    logits = lax.dot_general(x, lut, (((1,), (0,)), ((), ())),
                             preferred_element_type=jnp.float32)  # (TB, 2*TC)
    logits_cc = logits[:, :tc]
    logits_ic = logits[:, tc:]

    # --- smooth_l1(ccc, icc.detach()), beta=1, computed first so its
    # temporaries are dead before the LSE ones are created.  Padded classes
    # and padded batch rows have logits exactly 0 on both heads -> contribute
    # exactly 0, so no masking is needed here.
    d = logits_cc - logits_ic
    ad = jnp.abs(d)
    sl1 = jnp.where(ad < 1.0, 0.5 * d * d, ad - 0.5)
    sl1_acc[bi] = sl1_acc[bi] + jnp.sum(sl1, axis=-1, keepdims=True)

    # --- fused picked-logit accumulation for BOTH CE heads (one multiply +
    # one cross-lane reduce per step).
    col = ci * tc + lax.broadcasted_iota(jnp.int32, (tb, tc), 1)   # global class idx
    onehot = (col == tgt_ref[...]).astype(jnp.float32)
    p_acc[bi] = p_acc[bi] + jnp.sum(onehot * (logits_cc + logits_ic),
                                    axis=-1, keepdims=True)

    # --- online logsumexp for both heads.
    def lse_update(lcc, lic):
        def upd(lm, m_ref, l_ref):
            m_prev = m_ref[bi]
            m_new = jnp.maximum(m_prev, jnp.max(lm, axis=-1, keepdims=True))
            l_ref[bi] = (jnp.exp(m_prev - m_new) * l_ref[bi]
                         + jnp.sum(jnp.exp(lm - m_new), axis=-1, keepdims=True))
            m_ref[bi] = m_new
        upd(lcc, m_cc, l_cc)
        upd(lic, m_ic, l_ic)

    if valid_c % tc == 0:
        # No class padding anywhere (static): never mask.
        lse_update(logits_cc, logits_ic)
    else:
        # Only the last class tile has zero-padded columns; mask only there so
        # non-last tiles skip the compare + selects entirely.
        neg = jnp.float32(-1e30)

        @pl.when(ci == last_ct)
        def _masked():
            invalid = col >= valid_c
            lse_update(jnp.where(invalid, neg, logits_cc),
                       jnp.where(invalid, neg, logits_ic))

        @pl.when(ci != last_ct)
        def _unmasked():
            lse_update(logits_cc, logits_ic)

    @pl.when(ci == last_ct)
    def _finalize():
        lse_cc = m_cc[bi] + jnp.log(l_cc[bi])
        lse_ic = m_ic[bi] + jnp.log(l_ic[bi])
        ce = (lse_cc + lse_ic) - p_acc[bi]                          # (TB, 1)
        if valid_b % tb != 0:                                       # static skip
            row = bi * tb + lax.broadcasted_iota(jnp.int32, (tb, 1), 0)
            ce = jnp.where(row < valid_b, ce, 0.0)
        total = (jnp.sum(ce) * (1.0 / valid_b)
                 + weight * jnp.sum(sl1_acc[bi]) * (1.0 / (valid_b * valid_c)))
        # Lane-dense (8,128) store; wrapper reads element [0,0] per batch tile.
        out_ref[...] = jnp.full(out_ref.shape, total, dtype=out_ref.dtype)


def dcc_loss(inputs, targets, lut_ccc, lut_icc, *, scalar=20.0, weight=0.5,
             block_b=256, block_c=512):
    """Fused DCCLoss forward.  Class tiles are the OUTER grid axis so the
    packed LUT makes exactly one HBM pass; block_b/block_c are auto-shrunk to
    fit a ~36 MiB tile budget (v7x-safe) and vmem_limit_bytes is set
    explicitly (v5e's scoped default is 16 MiB)."""
    B, F = inputs.shape
    C = lut_ccc.shape[0]

    TB = _round_up(min(block_b, _round_up(B, 16)), 16)     # bf16 sublane packing
    TC = _round_up(min(block_c, _round_up(C, 128)), 128)   # lane-dense classes

    def _vmem_need(tb, tc):
        lane = lambda n: _round_up(n, 128)
        nbt = _cdiv(B, tb)
        lut_blk = 2 * _round_up(F, 16) * lane(2 * tc) * 2   # dbl-buffered bf16 LUT
        x_blk = 2 * tb * lane(F) * 2                        # dbl-buffered bf16 x
        tgt_blk = 2 * tb * 128 * 4
        out_blk = 2 * 8 * 128 * 4
        acc = 6 * nbt * tb * 128 * 4                        # (8,128)-tiled accum.
        epi = 6 * tb * lane(2 * tc) * 4                     # f32 epilogue temps
        return lut_blk + x_blk + tgt_blk + out_blk + acc + epi

    BUDGET = 36 << 20                 # headroom inside v7x's 64 MiB VMEM
    while _vmem_need(TB, TC) > BUDGET and TC > 128:
        TC = max(128, TC // 2)
    while _vmem_need(TB, TC) > BUDGET and TB > 16:
        TB = max(16, _round_up(TB // 2, 16))

    num_bt = _cdiv(B, TB)
    num_ct = _cdiv(C, TC)
    B_pad = num_bt * TB
    C_pad = num_ct * TC
    vmem_limit = int(min(48 << 20, max(_vmem_need(TB, TC) + (8 << 20), 32 << 20)))

    # Fold `scalar` into the bf16 cast of the LHS (single fused XLA op).
    x_bf = (inputs.astype(jnp.float32) * float(scalar)).astype(jnp.bfloat16)
    x_p = jnp.pad(x_bf, ((0, B_pad - B), (0, 0)))
    tgt_p = jnp.pad(targets.astype(jnp.int32),
                    ((0, B_pad - B),)).reshape(B_pad, 1)

    # Packed, lane-dense LUT: per class tile, (F, 2*TC) = [ccc cols | icc cols].
    lutc_p = jnp.pad(lut_ccc.astype(jnp.bfloat16), ((0, C_pad - C), (0, 0)))
    luti_p = jnp.pad(lut_icc.astype(jnp.bfloat16), ((0, C_pad - C), (0, 0)))
    lut_packed = jnp.concatenate(
        [jnp.transpose(lutc_p.reshape(num_ct, TC, F), (0, 2, 1)),
         jnp.transpose(luti_p.reshape(num_ct, TC, F), (0, 2, 1))],
        axis=2)                                            # (num_ct, F, 2*TC)

    kernel = functools.partial(dcc_loss_kernel, weight=float(weight),
                               valid_b=int(B), valid_c=int(C))

    cost = pl.CostEstimate(
        flops=2 * B_pad * (2 * C_pad) * F,
        transcendentals=2 * B_pad * C_pad + 4 * B_pad,
        bytes_accessed=(num_ct * x_p.size * 2            # x re-streamed per class tile
                        + lut_packed.size * 2            # LUT streamed exactly once
                        + num_ct * tgt_p.size * 4
                        + num_ct * num_bt * 8 * 128 * 4),
    )

    out = pl.pallas_call(
        kernel,
        out_shape=jax.ShapeDtypeStruct((num_bt, 8, 128), jnp.float32),
        grid_spec=pltpu.PrefetchScalarGridSpec(
            num_scalar_prefetch=0,
            grid=(num_ct, num_bt),       # class tiles OUTER -> LUT fetched once
            in_specs=[
                pl.BlockSpec((TB, F), lambda ci, bi: (bi, 0)),
                pl.BlockSpec((None, F, 2 * TC), lambda ci, bi: (ci, 0, 0)),
                pl.BlockSpec((TB, 1), lambda ci, bi: (bi, 0)),
            ],
            out_specs=pl.BlockSpec((None, 8, 128), lambda ci, bi: (bi, 0, 0)),
            scratch_shapes=[pltpu.VMEM((num_bt, TB, 1), jnp.float32)] * 6,
        ),
        compiler_params=pltpu.CompilerParams(
            # Both axes sequential: the class axis carries the online-LSE
            # reduction; the batch axis revisits the resident LUT tile.
            dimension_semantics=("arbitrary", "arbitrary"),
            vmem_limit_bytes=vmem_limit),
        cost_estimate=cost,
    )(x_p, lut_packed, tgt_p)

    # Tiny reduction of the per-batch-tile partial losses.
    return jnp.sum(out[:, 0, 0])


def dcc_loss_ref(inputs, targets, lut_ccc, lut_icc, *, scalar=20.0, weight=0.5):
    # Plain-JAX reference; quantizes the matmul operands to bf16 exactly like
    # the kernel (f32 accumulation) so the comparison is tight.
    xq = (inputs.astype(jnp.float32) * scalar).astype(jnp.bfloat16).astype(jnp.float32)
    cq = lut_ccc.astype(jnp.bfloat16).astype(jnp.float32)
    iq = lut_icc.astype(jnp.bfloat16).astype(jnp.float32)
    logits_ccc = jnp.matmul(xq, cq.T, precision=jax.lax.Precision.HIGHEST)
    logits_icc = jnp.matmul(xq, iq.T, precision=jax.lax.Precision.HIGHEST)

    def ce(logits):
        lse = jax.nn.logsumexp(logits, axis=-1)
        picked = jnp.take_along_axis(logits, targets[:, None], axis=-1)[:, 0]
        return jnp.mean(lse - picked)

    d = logits_ccc - logits_icc
    ad = jnp.abs(d)
    sl1 = jnp.mean(jnp.where(ad < 1.0, 0.5 * d * d, ad - 0.5))
    return ce(logits_ccc) + ce(logits_icc) + weight * sl1


if __name__ == "__main__":
    B, F, C = 8, 32, 16            # batch, num_features, num_classes
    scalar, weight = 20.0, 0.5     # momentum only affects backward; unused in fwd

    key = jax.random.PRNGKey(0)
    k_x, k_c, k_i, k_t = jax.random.split(key, 4)

    def row_norm(a):
        return a / jnp.linalg.norm(a, axis=-1, keepdims=True)

    inputs = row_norm(jax.random.normal(k_x, (B, F), dtype=jnp.float32))
    lut_ccc = row_norm(jax.random.normal(k_c, (C, F), dtype=jnp.float32))
    lut_icc = row_norm(jax.random.normal(k_i, (C, F), dtype=jnp.float32))
    targets = jax.random.randint(k_t, (B,), 0, C, dtype=jnp.int32)

    loss = dcc_loss(inputs, targets, lut_ccc, lut_icc, scalar=scalar, weight=weight)
    jax.block_until_ready(loss)

    ref = dcc_loss_ref(inputs, targets, lut_ccc, lut_icc, scalar=scalar, weight=weight)
    np.testing.assert_allclose(np.asarray(loss), np.asarray(ref), rtol=2e-3, atol=2e-3)

    print("KERNEL_OK")
</pallas_src>

<mosaic_0001>
module attributes {stable_mosaic.version = 11 : i64} {
  func.func @dcc_loss_kernel(%arg0: i32, %arg1: i32, %arg2: memref<16x32xbf16, #tpu.memory_space<vmem>>, %arg3: memref<1x32x256xbf16, #tpu.memory_space<vmem>>, %arg4: memref<16x1xi32, #tpu.memory_space<vmem>>, %arg5: memref<1x8x128xf32, #tpu.memory_space<vmem>>, %arg6: memref<1x16x1xf32, #tpu.memory_space<vmem>>, %arg7: memref<1x16x1xf32, #tpu.memory_space<vmem>>, %arg8: memref<1x16x1xf32, #tpu.memory_space<vmem>>, %arg9: memref<1x16x1xf32, #tpu.memory_space<vmem>>, %arg10: memref<1x16x1xf32, #tpu.memory_space<vmem>>, %arg11: memref<1x16x1xf32, #tpu.memory_space<vmem>>) attributes {dimension_semantics = [#tpu.dimension_semantics<arbitrary>, #tpu.dimension_semantics<arbitrary>], iteration_bounds = array<i64: 1, 1>, scalar_prefetch = 0 : i64, scratch_operands = 6 : i64, tpu.core_type = #tpu.core_type<tc>, window_params = [{transform_indices = @transform_0, window_bounds = array<i64: 16, 32>}, {transform_indices = @transform_1, window_bounds = array<i64: 1, 32, 256>}, {transform_indices = @transform_2, window_bounds = array<i64: 16, 1>}, {transform_indices = @transform_3, window_bounds = array<i64: 1, 8, 128>}]} {
    %c0_i32 = arith.constant 0 : i32
    %0 = arith.cmpi eq, %arg0, %c0_i32 : i32
    %1 = arith.extui %0 : i1 to i32
    %c0_i32_0 = arith.constant 0 : i32
    %2 = arith.cmpi ne, %1, %c0_i32_0 : i32
    scf.if %2 {
      %cst_27 = arith.constant -1.000000e+30 : f32
      %59 = vector.broadcast %cst_27 : f32 to vector<16x1xf32>
      %cst_28 = arith.constant 0.000000e+00 : f32
      %60 = vector.broadcast %cst_28 : f32 to vector<16x1xf32>
      %61 = arith.index_cast %arg1 : i32 to index
      %c0_29 = arith.constant 0 : index
      %c0_30 = arith.constant 0 : index
      %62 = vector.load %arg6[%61, %c0_29, %c0_30] : memref<1x16x1xf32, #tpu.memory_space<vmem>>, vector<1x16x1xf32>
      %63 = vector.shape_cast %62 : vector<1x16x1xf32> to vector<16x1xf32>
      %64 = vector.shape_cast %59 : vector<16x1xf32> to vector<1x16x1xf32>
      tpu.vector_store %arg6[%61, %c0_29, %c0_30], %64 {strides = array<i32>} : memref<1x16x1xf32, #tpu.memory_space<vmem>>, vector<1x16x1xf32>,
      %65 = arith.index_cast %arg1 : i32 to index
      %c0_31 = arith.constant 0 : index
      %c0_32 = arith.constant 0 : index
      %66 = vector.load %arg8[%65, %c0_31, %c0_32] : memref<1x16x1xf32, #tpu.memory_space<vmem>>, vector<1x16x1xf32>
      %67 = vector.shape_cast %66 : vector<1x16x1xf32> to vector<16x1xf32>
      %68 = vector.shape_cast %59 : vector<16x1xf32> to vector<1x16x1xf32>
      tpu.vector_store %arg8[%65, %c0_31, %c0_32], %68 {strides = array<i32>} : memref<1x16x1xf32, #tpu.memory_space<vmem>>, vector<1x16x1xf32>,
      %69 = arith.index_cast %arg1 : i32 to index
      %c0_33 = arith.constant 0 : index
      %c0_34 = arith.constant 0 : index
      %70 = vector.load %arg7[%69, %c0_33, %c0_34] : memref<1x16x1xf32, #tpu.memory_space<vmem>>, vector<1x16x1xf32>
      %71 = vector.shape_cast %70 : vector<1x16x1xf32> to vector<16x1xf32>
      %72 = vector.shape_cast %60 : vector<16x1xf32> to vector<1x16x1xf32>
      tpu.vector_store %arg7[%69, %c0_33, %c0_34], %72 {strides = array<i32>} : memref<1x16x1xf32, #tpu.memory_space<vmem>>, vector<1x16x1xf32>,
      %73 = arith.index_cast %arg1 : i32 to index
      %c0_35 = arith.constant 0 : index
      %c0_36 = arith.constant 0 : index
      %74 = vector.load %arg9[%73, %c0_35, %c0_36] : memref<1x16x1xf32, #tpu.memory_space<vmem>>, vector<1x16x1xf32>
      %75 = vector.shape_cast %74 : vector<1x16x1xf32> to vector<16x1xf32>
      %76 = vector.shape_cast %60 : vector<16x1xf32> to vector<1x16x1xf32>
      tpu.vector_store %arg9[%73, %c0_35, %c0_36], %76 {strides = array<i32>} : memref<1x16x1xf32, #tpu.memory_space<vmem>>, vector<1x16x1xf32>,
      %77 = arith.index_cast %arg1 : i32 to index
      %c0_37 = arith.constant 0 : index
      %c0_38 = arith.constant 0 : index
      %78 = vector.load %arg10[%77, %c0_37, %c0_38] : memref<1x16x1xf32, #tpu.memory_space<vmem>>, vector<1x16x1xf32>
      %79 = vector.shape_cast %78 : vector<1x16x1xf32> to vector<16x1xf32>
      %80 = vector.shape_cast %60 : vector<16x1xf32> to vector<1x16x1xf32>
      tpu.vector_store %arg10[%77, %c0_37, %c0_38], %80 {strides = array<i32>} : memref<1x16x1xf32, #tpu.memory_space<vmem>>, vector<1x16x1xf32>,
      %81 = arith.index_cast %arg1 : i32 to index
      %c0_39 = arith.constant 0 : index
      %c0_40 = arith.constant 0 : index
      %82 = vector.load %arg11[%81, %c0_39, %c0_40] : memref<1x16x1xf32, #tpu.memory_space<vmem>>, vector<1x16x1xf32>
      %83 = vector.shape_cast %82 : vector<1x16x1xf32> to vector<16x1xf32>
      %84 = vector.shape_cast %60 : vector<16x1xf32> to vector<1x16x1xf32>
      tpu.vector_store %arg11[%81, %c0_39, %c0_40], %84 {strides = array<i32>} : memref<1x16x1xf32, #tpu.memory_space<vmem>>, vector<1x16x1xf32>,
    } else {
    }
    %c0 = arith.constant 0 : index
    %c0_1 = arith.constant 0 : index
    %3 = vector.load %arg2[%c0, %c0_1] : memref<16x32xbf16, #tpu.memory_space<vmem>>, vector<16x32xbf16>
    %c0_2 = arith.constant 0 : index
    %c0_3 = arith.constant 0 : index
    %c0_4 = arith.constant 0 : index
    %4 = vector.load %arg3[%c0_2, %c0_3, %c0_4] : memref<1x32x256xbf16, #tpu.memory_space<vmem>>, vector<1x32x256xbf16>
    %5 = vector.shape_cast %4 : vector<1x32x256xbf16> to vector<32x256xbf16>
    %cst = arith.constant dense<0.000000e+00> : vector<16x256xf32>
    %6 = tpu.matmul %3, %5, %cst {dimension_numbers = #tpu.dot_dimension_numbers<[1], [0], [0], [1], [0, 0, 1, 1], [], []>} : vector<16x32xbf16>, vector<32x256xbf16>, vector<16x256xf32> -> vector<16x256xf32>
    %7 = vector.extract_strided_slice %6 {offsets = [0, 0], sizes = [16, 128], strides = [1, 1]} : vector<16x256xf32> to vector<16x128xf32>
    %8 = vector.extract_strided_slice %6 {offsets = [0, 128], sizes = [16, 128], strides = [1, 1]} : vector<16x256xf32> to vector<16x128xf32>
    %9 = arith.subf %7, %8 : vector<16x128xf32>
    %10 = math.absf %9 : vector<16x128xf32>
    %cst_5 = arith.constant 1.000000e+00 : f32
    %11 = vector.broadcast %cst_5 : f32 to vector<16x128xf32>
    %12 = arith.cmpf olt, %10, %11 : vector<16x128xf32>
    %cst_6 = arith.constant 5.000000e-01 : f32
    %13 = vector.broadcast %cst_6 : f32 to vector<16x128xf32>
    %14 = arith.mulf %13, %9 : vector<16x128xf32>
    %15 = arith.mulf %14, %9 : vector<16x128xf32>
    %cst_7 = arith.constant 5.000000e-01 : f32
    %16 = vector.broadcast %cst_7 : f32 to vector<16x128xf32>
    %17 = arith.subf %10, %16 : vector<16x128xf32>
    %18 = arith.select %12, %15, %17 : vector<16x128xi1>, vector<16x128xf32>
    %19 = arith.index_cast %arg1 : i32 to index
    %c0_8 = arith.constant 0 : index
    %c0_9 = arith.constant 0 : index
    %20 = vector.load %arg11[%19, %c0_8, %c0_9] : memref<1x16x1xf32, #tpu.memory_space<vmem>>, vector<1x16x1xf32>
    %21 = vector.shape_cast %20 : vector<1x16x1xf32> to vector<16x1xf32>
    %cst_10 = arith.constant dense<0.000000e+00> : vector<16xf32>
    %22 = vector.multi_reduction <add>, %18, %cst_10 [1] : vector<16x128xf32> to vector<16xf32>
    %23 = vector.shape_cast %22 : vector<16xf32> to vector<16x1xf32>
    %24 = arith.addf %21, %23 : vector<16x1xf32>
    %25 = arith.index_cast %arg1 : i32 to index
    %c0_11 = arith.constant 0 : index
    %c0_12 = arith.constant 0 : index
    %26 = vector.load %arg11[%25, %c0_11, %c0_12] : memref<1x16x1xf32, #tpu.memory_space<vmem>>, vector<1x16x1xf32>
    %27 = vector.shape_cast %26 : vector<1x16x1xf32> to vector<16x1xf32>
    %28 = vector.shape_cast %24 : vector<16x1xf32> to vector<1x16x1xf32>
    tpu.vector_store %arg11[%25, %c0_11, %c0_12], %28 {strides = array<i32>} : memref<1x16x1xf32, #tpu.memory_space<vmem>>, vector<1x16x1xf32>,
    %c128_i32 = arith.constant 128 : i32
    %29 = arith.muli %arg0, %c128_i32 : i32
    %30 = tpu.iota {dimensions = array<i32: 1>} : vector<16x128xi32>
    %31 = vector.broadcast %29 : i32 to vector<16x128xi32>
    %32 = arith.addi %31, %30 : vector<16x128xi32>
    %c0_13 = arith.constant 0 : index
    %c0_14 = arith.constant 0 : index
    %33 = vector.load %arg4[%c0_13, %c0_14] : memref<16x1xi32, #tpu.memory_space<vmem>>, vector<16x1xi32>
    %34 = vector.broadcast %33 : vector<16x1xi32> to vector<16x128xi32>
    %35 = arith.cmpi eq, %32, %34 : vector<16x128xi32>
    %36 = arith.extui %35 : vector<16x128xi1> to vector<16x128xi32>
    %37 = arith.sitofp %36 : vector<16x128xi32> to vector<16x128xf32>
    %38 = arith.index_cast %arg1 : i32 to index
    %c0_15 = arith.constant 0 : index
    %c0_16 = arith.constant 0 : index
    %39 = vector.load %arg10[%38, %c0_15, %c0_16] : memref<1x16x1xf32, #tpu.memory_space<vmem>>, vector<1x16x1xf32>
    %40 = vector.shape_cast %39 : vector<1x16x1xf32> to vector<16x1xf32>
    %41 = arith.addf %7, %8 : vector<16x128xf32>
    %42 = arith.mulf %37, %41 : vector<16x128xf32>
    %cst_17 = arith.constant dense<0.000000e+00> : vector<16xf32>
    %43 = vector.multi_reduction <add>, %42, %cst_17 [1] : vector<16x128xf32> to vector<16xf32>
    %44 = vector.shape_cast %43 : vector<16xf32> to vector<16x1xf32>
    %45 = arith.addf %40, %44 : vector<16x1xf32>
    %46 = arith.index_cast %arg1 : i32 to index
    %c0_18 = arith.constant 0 : index
    %c0_19 = arith.constant 0 : index
    %47 = vector.load %arg10[%46, %c0_18, %c0_19] : memref<1x16x1xf32, #tpu.memory_space<vmem>>, vector<1x16x1xf32>
    %48 = vector.shape_cast %47 : vector<1x16x1xf32> to vector<16x1xf32>
    %49 = vector.shape_cast %45 : vector<16x1xf32> to vector<1x16x1xf32>
    tpu.vector_store %arg10[%46, %c0_18, %c0_19], %49 {strides = array<i32>} : memref<1x16x1xf32, #tpu.memory_space<vmem>>, vector<1x16x1xf32>,
    %c0_i32_20 = arith.constant 0 : i32
    %50 = arith.cmpi eq, %arg0, %c0_i32_20 : i32
    %51 = arith.extui %50 : i1 to i32
    %cst_21 = arith.constant -1.000000e+30 : f32
    %c0_i32_22 = arith.constant 0 : i32
    %52 = arith.cmpi ne, %51, %c0_i32_22 : i32
    scf.if %52 {
      %c16_i32 = arith.constant 16 : i32
      %59 = vector.broadcast %c16_i32 : i32 to vector<16x128xi32>
      %60 = arith.cmpi sge, %32, %59 : vector<16x128xi32>
      %61 = vector.broadcast %cst_21 : f32 to vector<16x128xf32>
      %62 = arith.select %60, %61, %7 : vector<16x128xi1>, vector<16x128xf32>
      %63 = vector.broadcast %cst_21 : f32 to vector<16x128xf32>
      %64 = arith.select %60, %63, %8 : vector<16x128xi1>, vector<16x128xf32>
      %65 = arith.index_cast %arg1 : i32 to index
      %c0_27 = arith.constant 0 : index
      %c0_28 = arith.constant 0 : index
      %66 = vector.load %arg6[%65, %c0_27, %c0_28] : memref<1x16x1xf32, #tpu.memory_space<vmem>>, vector<1x16x1xf32>
      %67 = vector.shape_cast %66 : vector<1x16x1xf32> to vector<16x1xf32>
      %cst_29 = arith.constant dense<0xFF800000> : vector<16xf32>
      %68 = vector.multi_reduction <maximumf>, %62, %cst_29 [1] : vector<16x128xf32> to vector<16xf32>
      %69 = vector.shape_cast %68 : vector<16xf32> to vector<16x1xf32>
      %70 = arith.maximumf %67, %69 : vector<16x1xf32>
      %71 = arith.subf %67, %70 : vector<16x1xf32>
      %72 = math.exp %71 : vector<16x1xf32>
      %73 = arith.index_cast %arg1 : i32 to index
      %c0_30 = arith.constant 0 : index
      %c0_31 = arith.constant 0 : index
      %74 = vector.load %arg7[%73, %c0_30, %c0_31] : memref<1x16x1xf32, #tpu.memory_space<vmem>>, vector<1x16x1xf32>
      %75 = vector.shape_cast %74 : vector<1x16x1xf32> to vector<16x1xf32>
      %76 = arith.mulf %72, %75 : vector<16x1xf32>
      %77 = vector.broadcast %70 : vector<16x1xf32> to vector<16x128xf32>
      %78 = arith.subf %62, %77 : vector<16x128xf32>
      %79 = math.exp %78 : vector<16x128xf32>
      %cst_32 = arith.constant dense<0.000000e+00> : vector<16xf32>
      %80 = vector.multi_reduction <add>, %79, %cst_32 [1] : vector<16x128xf32> to vector<16xf32>
      %81 = vector.shape_cast %80 : vector<16xf32> to vector<16x1xf32>
      %82 = arith.addf %76, %81 : vector<16x1xf32>
      %83 = arith.index_cast %arg1 : i32 to index
      %c0_33 = arith.constant 0 : index
      %c0_34 = arith.constant 0 : index
      %84 = vector.load %arg7[%83, %c0_33, %c0_34] : memref<1x16x1xf32, #tpu.memory_space<vmem>>, vector<1x16x1xf32>
      %85 = vector.shape_cast %84 : vector<1x16x1xf32> to vector<16x1xf32>
      %86 = vector.shape_cast %82 : vector<16x1xf32> to vector<1x16x1xf32>
      tpu.vector_store %arg7[%83, %c0_33, %c0_34], %86 {strides = array<i32>} : memref<1x16x1xf32, #tpu.memory_space<vmem>>, vector<1x16x1xf32>,
      %87 = arith.index_cast %arg1 : i32 to index
      %c0_35 = arith.constant 0 : index
      %c0_36 = arith.constant 0 : index
      %88 = vector.load %arg6[%87, %c0_35, %c0_36] : memref<1x16x1xf32, #tpu.memory_space<vmem>>, vector<1x16x1xf32>
      %89 = vector.shape_cast %88 : vector<1x16x1xf32> to vector<16x1xf32>
      %90 = vector.shape_cast %70 : vector<16x1xf32> to vector<1x16x1xf32>
      tpu.vector_store %arg6[%87, %c0_35, %c0_36], %90 {strides = array<i32>} : memref<1x16x1xf32, #tpu.memory_space<vmem>>, vector<1x16x1xf32>,
      %91 = arith.index_cast %arg1 : i32 to index
      %c0_37 = arith.constant 0 : index
      %c0_38 = arith.constant 0 : index
      %92 = vector.load %arg8[%91, %c0_37, %c0_38] : memref<1x16x1xf32, #tpu.memory_space<vmem>>, vector<1x16x1xf32>
      %93 = vector.shape_cast %92 : vector<1x16x1xf32> to vector<16x1xf32>
      %cst_39 = arith.constant dense<0xFF800000> : vector<16xf32>
      %94 = vector.multi_reduction <maximumf>, %64, %cst_39 [1] : vector<16x128xf32> to vector<16xf32>
      %95 = vector.shape_cast %94 : vector<16xf32> to vector<16x1xf32>
      %96 = arith.maximumf %93, %95 : vector<16x1xf32>
      %97 = arith.subf %93, %96 : vector<16x1xf32>
      %98 = math.exp %97 : vector<16x1xf32>
      %99 = arith.index_cast %arg1 : i32 to index
      %c0_40 = arith.constant 0 : index
      %c0_41 = arith.constant 0 : index
      %100 = vector.load %arg9[%99, %c0_40, %c0_41] : memref<1x16x1xf32, #tpu.memory_space<vmem>>, vector<1x16x1xf32>
      %101 = vector.shape_cast %100 : vector<1x16x1xf32> to vector<16x1xf32>
      %102 = arith.mulf %98, %101 : vector<16x1xf32>
      %103 = vector.broadcast %96 : vector<16x1xf32> to vector<16x128xf32>
      %104 = arith.subf %64, %103 : vector<16x128xf32>
      %105 = math.exp %104 : vector<16x128xf32>
      %cst_42 = arith.constant dense<0.000000e+00> : vector<16xf32>
      %106 = vector.multi_reduction <add>, %105, %cst_42 [1] : vector<16x128xf32> to vector<16xf32>
      %107 = vector.shape_cast %106 : vector<16xf32> to vector<16x1xf32>
      %108 = arith.addf %102, %107 : vector<16x1xf32>
      %109 = arith.index_cast %arg1 : i32 to index
      %c0_43 = arith.constant 0 : index
      %c0_44 = arith.constant 0 : index
      %110 = vector.load %arg9[%109, %c0_43, %c0_44] : memref<1x16x1xf32, #tpu.memory_space<vmem>>, vector<1x16x1xf32>
      %111 = vector.shape_cast %110 : vector<1x16x1xf32> to vector<16x1xf32>
      %112 = vector.shape_cast %108 : vector<16x1xf32> to vector<1x16x1xf32>
      tpu.vector_store %arg9[%109, %c0_43, %c0_44], %112 {strides = array<i32>} : memref<1x16x1xf32, #tpu.memory_space<vmem>>, vector<1x16x1xf32>,
      %113 = arith.index_cast %arg1 : i32 to index
      %c0_45 = arith.constant 0 : index
      %c0_46 = arith.constant 0 : index
      %114 = vector.load %arg8[%113, %c0_45, %c0_46] : memref<1x16x1xf32, #tpu.memory_space<vmem>>, vector<1x16x1xf32>
      %115 = vector.shape_cast %114 : vector<1x16x1xf32> to vector<16x1xf32>
      %116 = vector.shape_cast %96 : vector<16x1xf32> to vector<1x16x1xf32>
      tpu.vector_store %arg8[%113, %c0_45, %c0_46], %116 {strides = array<i32>} : memref<1x16x1xf32, #tpu.memory_space<vmem>>, vector<1x16x1xf32>,
    } else {
    }
    %c0_i32_23 = arith.constant 0 : i32
    %53 = arith.cmpi ne, %arg0, %c0_i32_23 : i32
    %54 = arith.extui %53 : i1 to i32
    %c0_i32_24 = arith.constant 0 : i32
    %55 = arith.cmpi ne, %54, %c0_i32_24 : i32
    scf.if %55 {
      %59 = arith.index_cast %arg1 : i32 to index
      %c0_27 = arith.constant 0 : index
      %c0_28 = arith.constant 0 : index
      %60 = vector.load %arg6[%59, %c0_27, %c0_28] : memref<1x16x1xf32, #tpu.memory_space<vmem>>, vector<1x16x1xf32>
      %61 = vector.shape_cast %60 : vector<1x16x1xf32> to vector<16x1xf32>
      %cst_29 = arith.constant dense<0xFF800000> : vector<16xf32>
      %62 = vector.multi_reduction <maximumf>, %7, %cst_29 [1] : vector<16x128xf32> to vector<16xf32>
      %63 = vector.shape_cast %62 : vector<16xf32> to vector<16x1xf32>
      %64 = arith.maximumf %61, %63 : vector<16x1xf32>
      %65 = arith.subf %61, %64 : vector<16x1xf32>
      %66 = math.exp %65 : vector<16x1xf32>
      %67 = arith.index_cast %arg1 : i32 to index
      %c0_30 = arith.constant 0 : index
      %c0_31 = arith.constant 0 : index
      %68 = vector.load %arg7[%67, %c0_30, %c0_31] : memref<1x16x1xf32, #tpu.memory_space<vmem>>, vector<1x16x1xf32>
      %69 = vector.shape_cast %68 : vector<1x16x1xf32> to vector<16x1xf32>
      %70 = arith.mulf %66, %69 : vector<16x1xf32>
      %71 = vector.broadcast %64 : vector<16x1xf32> to vector<16x128xf32>
      %72 = arith.subf %7, %71 : vector<16x128xf32>
      %73 = math.exp %72 : vector<16x128xf32>
      %cst_32 = arith.constant dense<0.000000e+00> : vector<16xf32>
      %74 = vector.multi_reduction <add>, %73, %cst_32 [1] : vector<16x128xf32> to vector<16xf32>
      %75 = vector.shape_cast %74 : vector<16xf32> to vector<16x1xf32>
      %76 = arith.addf %70, %75 : vector<16x1xf32>
      %77 = arith.index_cast %arg1 : i32 to index
      %c0_33 = arith.constant 0 : index
      %c0_34 = arith.constant 0 : index
      %78 = vector.load %arg7[%77, %c0_33, %c0_34] : memref<1x16x1xf32, #tpu.memory_space<vmem>>, vector<1x16x1xf32>
      %79 = vector.shape_cast %78 : vector<1x16x1xf32> to vector<16x1xf32>
      %80 = vector.shape_cast %76 : vector<16x1xf32> to vector<1x16x1xf32>
      tpu.vector_store %arg7[%77, %c0_33, %c0_34], %80 {strides = array<i32>} : memref<1x16x1xf32, #tpu.memory_space<vmem>>, vector<1x16x1xf32>,
      %81 = arith.index_cast %arg1 : i32 to index
      %c0_35 = arith.constant 0 : index
      %c0_36 = arith.constant 0 : index
      %82 = vector.load %arg6[%81, %c0_35, %c0_36] : memref<1x16x1xf32, #tpu.memory_space<vmem>>, vector<1x16x1xf32>
      %83 = vector.shape_cast %82 : vector<1x16x1xf32> to vector<16x1xf32>
      %84 = vector.shape_cast %64 : vector<16x1xf32> to vector<1x16x1xf32>
      tpu.vector_store %arg6[%81, %c0_35, %c0_36], %84 {strides = array<i32>} : memref<1x16x1xf32, #tpu.memory_space<vmem>>, vector<1x16x1xf32>,
      %85 = arith.index_cast %arg1 : i32 to index
      %c0_37 = arith.constant 0 : index
      %c0_38 = arith.constant 0 : index
      %86 = vector.load %arg8[%85, %c0_37, %c0_38] : memref<1x16x1xf32, #tpu.memory_space<vmem>>, vector<1x16x1xf32>
      %87 = vector.shape_cast %86 : vector<1x16x1xf32> to vector<16x1xf32>
      %cst_39 = arith.constant dense<0xFF800000> : vector<16xf32>
      %88 = vector.multi_reduction <maximumf>, %8, %cst_39 [1] : vector<16x128xf32> to vector<16xf32>
      %89 = vector.shape_cast %88 : vector<16xf32> to vector<16x1xf32>
      %90 = arith.maximumf %87, %89 : vector<16x1xf32>
      %91 = arith.subf %87, %90 : vector<16x1xf32>
      %92 = math.exp %91 : vector<16x1xf32>
      %93 = arith.index_cast %arg1 : i32 to index
      %c0_40 = arith.constant 0 : index
      %c0_41 = arith.constant 0 : index
      %94 = vector.load %arg9[%93, %c0_40, %c0_41] : memref<1x16x1xf32, #tpu.memory_space<vmem>>, vector<1x16x1xf32>
      %95 = vector.shape_cast %94 : vector<1x16x1xf32> to vector<16x1xf32>
      %96 = arith.mulf %92, %95 : vector<16x1xf32>
      %97 = vector.broadcast %90 : vector<16x1xf32> to vector<16x128xf32>
      %98 = arith.subf %8, %97 : vector<16x128xf32>
      %99 = math.exp %98 : vector<16x128xf32>
      %cst_42 = arith.constant dense<0.000000e+00> : vector<16xf32>
      %100 = vector.multi_reduction <add>, %99, %cst_42 [1] : vector<16x128xf32> to vector<16xf32>
      %101 = vector.shape_cast %100 : vector<16xf32> to vector<16x1xf32>
      %102 = arith.addf %96, %101 : vector<16x1xf32>
      %103 = arith.index_cast %arg1 : i32 to index
      %c0_43 = arith.constant 0 : index
      %c0_44 = arith.constant 0 : index
      %104 = vector.load %arg9[%103, %c0_43, %c0_44] : memref<1x16x1xf32, #tpu.memory_space<vmem>>, vector<1x16x1xf32>
      %105 = vector.shape_cast %104 : vector<1x16x1xf32> to vector<16x1xf32>
      %106 = vector.shape_cast %102 : vector<16x1xf32> to vector<1x16x1xf32>
      tpu.vector_store %arg9[%103, %c0_43, %c0_44], %106 {strides = array<i32>} : memref<1x16x1xf32, #tpu.memory_space<vmem>>, vector<1x16x1xf32>,
      %107 = arith.index_cast %arg1 : i32 to index
      %c0_45 = arith.constant 0 : index
      %c0_46 = arith.constant 0 : index
      %108 = vector.load %arg8[%107, %c0_45, %c0_46] : memref<1x16x1xf32, #tpu.memory_space<vmem>>, vector<1x16x1xf32>
      %109 = vector.shape_cast %108 : vector<1x16x1xf32> to vector<16x1xf32>
      %110 = vector.shape_cast %90 : vector<16x1xf32> to vector<1x16x1xf32>
      tpu.vector_store %arg8[%107, %c0_45, %c0_46], %110 {strides = array<i32>} : memref<1x16x1xf32, #tpu.memory_space<vmem>>, vector<1x16x1xf32>,
    } else {
    }
    %c0_i32_25 = arith.constant 0 : i32
    %56 = arith.cmpi eq, %arg0, %c0_i32_25 : i32
    %57 = arith.extui %56 : i1 to i32
    %c0_i32_26 = arith.constant 0 : i32
    %58 = arith.cmpi ne, %57, %c0_i32_26 : i32
    scf.if %58 {
      %59 = arith.index_cast %arg1 : i32 to index
      %c0_27 = arith.constant 0 : index
      %c0_28 = arith.constant 0 : index
      %60 = vector.load %arg6[%59, %c0_27, %c0_28] : memref<1x16x1xf32, #tpu.memory_space<vmem>>, vector<1x16x1xf32>
      %61 = vector.shape_cast %60 : vector<1x16x1xf32> to vector<16x1xf32>
      %62 = arith.index_cast %arg1 : i32 to index
      %c0_29 = arith.constant 0 : index
      %c0_30 = arith.constant 0 : index
      %63 = vector.load %arg7[%62, %c0_29, %c0_30] : memref<1x16x1xf32, #tpu.memory_space<vmem>>, vector<1x16x1xf32>
      %64 = vector.shape_cast %63 : vector<1x16x1xf32> to vector<16x1xf32>
      %65 = math.log %64 : vector<16x1xf32>
      %66 = arith.addf %61, %65 : vector<16x1xf32>
      %67 = arith.index_cast %arg1 : i32 to index
      %c0_31 = arith.constant 0 : index
      %c0_32 = arith.constant 0 : index
      %68 = vector.load %arg8[%67, %c0_31, %c0_32] : memref<1x16x1xf32, #tpu.memory_space<vmem>>, vector<1x16x1xf32>
      %69 = vector.shape_cast %68 : vector<1x16x1xf32> to vector<16x1xf32>
      %70 = arith.index_cast %arg1 : i32 to index
      %c0_33 = arith.constant 0 : index
      %c0_34 = arith.constant 0 : index
      %71 = vector.load %arg9[%70, %c0_33, %c0_34] : memref<1x16x1xf32, #tpu.memory_space<vmem>>, vector<1x16x1xf32>
      %72 = vector.shape_cast %71 : vector<1x16x1xf32> to vector<16x1xf32>
      %73 = math.log %72 : vector<16x1xf32>
      %74 = arith.addf %69, %73 : vector<16x1xf32>
      %75 = arith.addf %66, %74 : vector<16x1xf32>
      %76 = arith.index_cast %arg1 : i32 to index
      %c0_35 = arith.constant 0 : index
      %c0_36 = arith.constant 0 : index
      %77 = vector.load %arg10[%76, %c0_35, %c0_36] : memref<1x16x1xf32, #tpu.memory_space<vmem>>, vector<1x16x1xf32>
      %78 = vector.shape_cast %77 : vector<1x16x1xf32> to vector<16x1xf32>
      %79 = arith.subf %75, %78 : vector<16x1xf32>
      %c16_i32 = arith.constant 16 : i32
      %80 = arith.muli %arg1, %c16_i32 : i32
      %81 = tpu.iota {dimensions = array<i32: 0>} : vector<16x1xi32>
      %82 = vector.broadcast %80 : i32 to vector<16x1xi32>
      %83 = arith.addi %82, %81 : vector<16x1xi32>
      %c8_i32 = arith.constant 8 : i32
      %84 = vector.broadcast %c8_i32 : i32 to vector<16x1xi32>
      %85 = arith.cmpi slt, %83, %84 : vector<16x1xi32>
      %cst_37 = arith.constant 0.000000e+00 : f32
      %86 = vector.broadcast %cst_37 : f32 to vector<16x1xf32>
      %87 = arith.select %85, %79, %86 : vector<16x1xi1>, vector<16x1xf32>
      %88 = vector.shape_cast %87 : vector<16x1xf32> to vector<1x16x1xf32>
      %cst_38 = arith.constant dense<0.000000e+00> : vector<1xf32>
      %89 = vector.multi_reduction <add>, %88, %cst_38 [1, 2] : vector<1x16x1xf32> to vector<1xf32>
      %90 = vector.shape_cast %89 : vector<1xf32> to vector<1x1x1xf32>
      %91 = vector.extract %90[0, 0, 0] : f32 from vector<1x1x1xf32>
      %cst_39 = arith.constant 1.250000e-01 : f32
      %92 = arith.mulf %91, %cst_39 : f32
      %93 = arith.index_cast %arg1 : i32 to index
      %c0_40 = arith.constant 0 : index
      %c0_41 = arith.constant 0 : index
      %94 = vector.load %arg11[%93, %c0_40, %c0_41] : memref<1x16x1xf32, #tpu.memory_space<vmem>>, vector<1x16x1xf32>
      %95 = vector.shape_cast %94 : vector<1x16x1xf32> to vector<16x1xf32>
      %96 = vector.shape_cast %95 : vector<16x1xf32> to vector<1x16x1xf32>
      %cst_42 = arith.constant dense<0.000000e+00> : vector<1xf32>
      %97 = vector.multi_reduction <add>, %96, %cst_42 [1, 2] : vector<1x16x1xf32> to vector<1xf32>
      %98 = vector.shape_cast %97 : vector<1xf32> to vector<1x1x1xf32>
      %99 = vector.extract %98[0, 0, 0] : f32 from vector<1x1x1xf32>
      %cst_43 = arith.constant 5.000000e-01 : f32
      %100 = arith.mulf %cst_43, %99 : f32
      %cst_44 = arith.constant 7.812500e-03 : f32
      %101 = arith.mulf %100, %cst_44 : f32
      %102 = arith.addf %92, %101 : f32
      %103 = vector.broadcast %102 : f32 to vector<8x128xf32>
      %c0_45 = arith.constant 0 : index
      %c0_46 = arith.constant 0 : index
      %c0_47 = arith.constant 0 : index
      %104 = vector.load %arg5[%c0_45, %c0_46, %c0_47] : memref<1x8x128xf32, #tpu.memory_space<vmem>>, vector<1x8x128xf32>
      %105 = vector.shape_cast %104 : vector<1x8x128xf32> to vector<8x128xf32>
      %106 = vector.shape_cast %103 : vector<8x128xf32> to vector<1x8x128xf32>
      tpu.vector_store %arg5[%c0_45, %c0_46, %c0_47], %106 {strides = array<i32>} : memref<1x8x128xf32, #tpu.memory_space<vmem>>, vector<1x8x128xf32>,
    } else {
    }
    return
  }
  func.func @transform_0(%arg0: i32, %arg1: i32) -> (i32, i32) {
    %c0_i32 = arith.constant 0 : i32
    %c0_i32_0 = arith.constant 0 : i32
    return %arg1, %c0_i32 : i32, i32
  }
  func.func @transform_1(%arg0: i32, %arg1: i32) -> (i32, i32, i32) {
    %c0_i32 = arith.constant 0 : i32
    %c0_i32_0 = arith.constant 0 : i32
    %c0_i32_1 = arith.constant 0 : i32
    return %arg0, %c0_i32, %c0_i32_0 : i32, i32, i32
  }
  func.func @transform_2(%arg0: i32, %arg1: i32) -> (i32, i32) {
    %c0_i32 = arith.constant 0 : i32
    %c0_i32_0 = arith.constant 0 : i32
    return %arg1, %c0_i32 : i32, i32
  }
  func.func @transform_3(%arg0: i32, %arg1: i32) -> (i32, i32, i32) {
    %c0_i32 = arith.constant 0 : i32
    %c0_i32_0 = arith.constant 0 : i32
    %c0_i32_1 = arith.constant 0 : i32
    return %arg1, %c0_i32, %c0_i32_0 : i32, i32, i32
  }
}

</mosaic_0001>

<bundles_post_ra>
// kernel: tpu_custom_call.1
= control target key start
LH: loop header
LB: loop body
LE: loop exit
PB: predicated region body
PF: predicated region fallthrough
CT: control target
= control target key end

     0   :  { %8 = vsyncpa [#allocation9], 0  ;;  %s697_s0 = inlined_call_operand.vmem [shape: bf16[16,32], index: 0, kind: input, shape index: {}]   ;;  %s698_s1 = inlined_call_operand.hbm [shape: bf16[1,32,256], index: 1, kind: input, shape index: {}]   ;;  %s699_s2 = inlined_call_operand.vmem [shape: s32[16,1], index: 2, kind: input, shape index: {}]   ;;  %s700_s3 = inlined_call_operand.hbm [shape: f32[1,8,128], index: 3, kind: output, shape index: {}]  }
   0x1   :  { %9 = vsyncpa [#allocation10], 0  ;;  %s16_s14 = sshll.u32 %s698_s1, 4  ;;  %s585_s15 = smov [#allocation8]   ;;  %s17_s14 = int_to_ptr.hbm [resolvable:$true] %s16_s14 }
   0x2   :  { %s18_s16 = sshll.u32 %s585_s15, 4  ;;  %s586_s17 = smov 128   ;;  %s19_s16 = int_to_ptr.vmem [resolvable:$true] %s18_s16 }
   0x3   :  { %s587_s18 = smov 8  }
   0x4   :  { %24 = dma.hbm_to_vmem [thread:$0]  %s17_s14, 512, %s19_s16, [#allocation9], %s586_s17, %s586_s17, %s587_s18  }
   0x5   :  { %581 = dma.done.wait [#allocation9], 512  }
   0x6   :  { %582 = vsyncadd [#allocation9], 4294966784  ;;  %v588_v0 = vmov 0   ;;  %v482_v1 = vld [vmem:[#allocation8 + $0x10] sm:$0xf]  ;;  %v151_v12 = vld [vmem:[%s699_s2] sm:$0xff]  ;;  %v147_v17 = vlaneseq }
   0x7   :  { %511 = vset.pattern.permute.xlu2 %v588_v0  ;;  %510 = vset.pattern.permute.xlu1 %v588_v0  ;;  %v498_v2 = vld [vmem:[#allocation8 + $0x14] sm:$0xf0]  ;;  %v497_v3 = vld [vmem:[#allocation8 + $0x14] sm:$0xf]  ;;  %v484_v5 = vld [vmem:[#allocation8 + $0x18] sm:$0xf0] }
   0x8   :  { %512 = vset.pattern.permute.xlu0 %v588_v0  ;;  %v483_v4 = vor.u32 %v498_v2, %v482_v1  ;;  %v474_v6 = vld [vmem:[#allocation8] sm:$0xf]  ;;  %v496_v7 = vld [vmem:[#allocation8 + $0x4] sm:$0xf0]  ;;  %v487_v8 = vor.u32 %v497_v3, %v484_v5  ;;  %v495_v9 = vld [vmem:[#allocation8 + $0x4] sm:$0xf]  ;;  %154 = vperm.xlu2 %511, %v151_v12  }
   0x9   :  { %v476_v10 = vld [vmem:[#allocation8 + $0x8] sm:$0xf0]  ;;  %v475_v11 = vor.u32 %v496_v7, %v474_v6  ;;  %v494_v14 = vld [vmem:[%s697_s0] sm:$0xff]  ;;  %vm87_vm0 = vcmask 261120   ;;  %vm38_vm1 = vcmask 7168   ;;  %v590_v16 = vmov 0.0  }
   0xa   :  { %97 = vmatpush.bf16.msra.mxu0 %v483_v4  ;;  %111 = vmatpush.bf16.msra.mxu1 %v487_v8  ;;  %v479_v13 = vor.u32 %v495_v9, %v476_v10  ;;  %v589_v15 = vmov -1e+30   ;;  %45 = vst.msk [vmem:[#allocation3] sm:$0xff] %vm38_vm1, %v590_v16  ;;  %v641_v18 = vand.u32 127, %v147_v17  ;;  %s591_s26 = smov [#allocation11]   ;;  %s458_s4 = sshll.u32 %s700_s3, 4  ;;  %s459_s4 = int_to_ptr.hbm [resolvable:$true] %s458_s4 }
   0xb   :  { %39 = vst.msk [vmem:[#allocation2] sm:$0xff] %vm38_vm1, %v589_v15  ;;  %s456_s27 = sshll.u32 %s591_s26, 4  ;;  %s457_s27 = int_to_ptr.vmem [resolvable:$true] %s456_s27 }
   0xc   :  { %40 = vst.msk [vmem:[#allocation2 + $0x8] sm:$0xff] %vm38_vm1, %v589_v15  ;;  %vm183_vm2 = vcmp.ge.s32.totalorder %v641_v18, 16 }
   0xd   :  { %42 = vst.msk [vmem:[#allocation4] sm:$0xff] %vm38_vm1, %v589_v15 }
   0xe   :  { %98 = vmatpush.bf16.msra.mxu0 %v475_v11  ;;  %112 = vmatpush.bf16.msra.mxu1 %v479_v13  ;;  %43 = vst.msk [vmem:[#allocation4 + $0x8] sm:$0xff] %vm38_vm1, %v589_v15 }
   0xf   :  { %46 = vst.msk [vmem:[#allocation3 + $0x8] sm:$0xff] %vm38_vm1, %v590_v16 }
  0x10   :  { %48 = vst.msk [vmem:[#allocation5] sm:$0xff] %vm38_vm1, %v590_v16 }
  0x11   :  { %488 = vmatmul.msk.bf16.vlgmr.msra.gmra.mxu0 %vm87_vm0, %v494_v14  ;;  %489 = vmatmul.msk.bf16.vlgmr.msra.gmra.mxu1 %vm87_vm0, %v494_v14  ;;  %49 = vst.msk [vmem:[#allocation5 + $0x8] sm:$0xff] %vm38_vm1, %v590_v16  ;;  %v204_v2 = vld [vmem:[#allocation3] sm:$0xff] }
  0x12   :  { %51 = vst.msk [vmem:[#allocation6] sm:$0xff] %vm38_vm1, %v590_v16  ;;  %v189_v28 = vld [vmem:[#allocation2] sm:$0xff] }
  0x13   :  { %52 = vst.msk [vmem:[#allocation6 + $0x8] sm:$0xff] %vm38_vm1, %v590_v16 }
  0x14   :  { %54 = vst.msk [vmem:[#allocation7] sm:$0xff] %vm38_vm1, %v590_v16  ;;  %v235_v32 = vld [vmem:[#allocation4] sm:$0xff] }
  0x15   :  { %55 = vst.msk [vmem:[#allocation7 + $0x8] sm:$0xff] %vm38_vm1, %v590_v16 }
  0x17   :  { %v250_v7 = vld [vmem:[#allocation5] sm:$0xff] }
  0x19   :  { %v166_v17 = vld [vmem:[#allocation6] sm:$0xff] }
  0x1b   :  { %v135_v59 = vld [vmem:[#allocation7] sm:$0xff] }
  0x1c   :  { %v136_v11 = vld [vmem:[#allocation7 + $0x8] sm:$0xff] }
  0x62   :  { %v155_v54 = vpop.permute.xlu2 %154 }
  0x63   :  { %vm159_vm5 = vcmp.eq.s32.totalorder %v641_v18, %v155_v54 }
  0x64   :  { %v492_v56 = vsel %vm159_vm5, 1.0, %v590_v16 }
  0x8e   :  { %v100_v19 = vpop.f32.mrf.mxu0  ;;  %v114_v20 = vpop.f32.mrf.mxu1 }
  0x8f   :  { %v184_v21 = vsel %vm183_vm2, -1e+30, %v100_v19  ;;  %v119_v22 = vsub.f32 %v100_v19, %v114_v20  ;;  %v168_v23 = vadd.f32 %v114_v20, %v100_v19  ;;  %v186_v24 = vsel %vm183_vm2, -1e+30, %v114_v20 }
  0x90   :  { %191 = vmax.xlane.f32.xlu0 %v184_v21 }
  0x91   :  { %v121_v36 = vand.u32 2147483647, %v119_v22  ;;  %v125_v37 = vmul.f32 0.5, %v119_v22  ;;  %v170_v57 = vmul.f32 %v492_v56, %v168_v23 }
  0x93   :  { %v127_v38 = vmul.f32 %v125_v37, %v119_v22  ;;  %v490_v39 = vadd.f32 -0.5, %v121_v36  ;;  %vm123_vm3 = vcmp.lt.f32.partialorder %v121_v36, 1.0 }
  0x95   :  { %v131_v40 = vsel %vm123_vm3, %v127_v38, %v490_v39 }
  0x96   :  { %v102_v25 = vpop.f32.mrf.mxu0  ;;  %v116_v26 = vpop.f32.mrf.mxu1 }
  0x97   :  { %v648_v27 = vadd.f32 %v116_v26, %v102_v25  ;;  %v120_v48 = vsub.f32 %v102_v25, %v116_v26  ;;  %v656_v58 = vsel %vm183_vm2, -1e+30, %v102_v25  ;;  %v661_v61 = vsel %vm183_vm2, -1e+30, %v116_v26 }
  0x98   :  { %237 = vmax.xlane.f32.xlu0 %v186_v24 }
  0x99   :  { %v126_v50 = vmul.f32 0.5, %v120_v48  ;;  %v122_v51 = vand.u32 2147483647, %v120_v48 }
  0x9b   :  { %v128_v52 = vmul.f32 %v126_v50, %v120_v48  ;;  %v491_v53 = vadd.f32 -0.5, %v122_v51  ;;  %vm124_vm4 = vcmp.lt.f32.partialorder %v122_v51, 1.0 }
  0x9d   :  { %v132_v55 = vsel %vm124_vm4, %v128_v52, %v491_v53 }
 0x103   :  { %v192_v29 = vpop.xlane.xlu0 %191 }
 0x104   :  { %v195_v30 = vmax.f32 %v189_v28, %v192_v29 }
 0x106   :  { %v197_v31 = vsub.f32 %v189_v28, %v195_v30  ;;  %232 = vst.msk [vmem:[#allocation2] sm:$0xff] %vm38_vm1, %v195_v30  ;;  %210 = vperm.xlu1 %510, %v195_v30  }
 0x108   :  { %v199_v63 = vmul.f32 1.442695, %v197_v31 }
 0x10b   :  { %v238_v33 = vpop.xlane.xlu0 %237 }
 0x10c   :  { %v241_v34 = vmax.f32 %v235_v32, %v238_v33  ;;  %v671_v33 = vld [vmem:[#allocation2 + $0x8] sm:$0xff] }
 0x10e   :  { %v243_v35 = vsub.f32 %v235_v32, %v241_v34  ;;  %278 = vst.msk [vmem:[#allocation4] sm:$0xff] %vm38_vm1, %v241_v34  ;;  %256 = vperm.xlu1 %510, %v241_v34   ;;  %v380_v34 = vld [vmem:[#allocation2] sm:$0xff] }
 0x110   :  { %v245_v0 = vmul.f32 1.442695, %v243_v35 }
 0x115   :  { %v392_v31 = vld [vmem:[#allocation4] sm:$0xff] }
 0x138   :  { %137 = vadd.xlane.f32.xlu1 %v131_v40 }
 0x178   :  { %v211_v41 = vpop.permute.xlu1 %210 }
 0x179   :  { %v218_v42 = vsub.f32 %v184_v21, %v211_v41 }
 0x17b   :  { %v220_v43 = vmul.f32 1.442695, %v218_v42 }
 0x17d   :  { %513 = vpow2.f32 %v220_v43  ;;  %v236_v43 = vld [vmem:[#allocation4 + $0x8] sm:$0xff] }
 0x180   :  { %v257_v44 = vpop.permute.xlu1 %256 }
 0x181   :  { %v264_v45 = vsub.f32 %v186_v24, %v257_v44 }
 0x183   :  { %v514_v46 = vpop.eup %513  ;;  %v266_v47 = vmul.f32 1.442695, %v264_v45 }
 0x184   :  { %224 = vadd.xlane.f32.xlu2 %v514_v46 }
 0x185   :  { %515 = vpow2.f32 %v266_v47  ;;  %v152_v47 = vld [vmem:[%s699_s2 + $0x8] sm:$0xff] }
 0x186   :  { %517 = vpow2.f32 %v199_v63 }
 0x187   :  { %519 = vpow2.f32 %v245_v0 }
 0x18b   :  { %v516_v49 = vpop.eup %515 }
 0x18c   :  { %270 = vadd.xlane.f32.xlu0 %v516_v49  ;;  %v518_v1 = vpop.eup %517 }
 0x18d   :  { %v206_v3 = vmul.f32 %v518_v1, %v204_v2  ;;  %v520_v6 = vpop.eup %519 }
 0x18e   :  { %v252_v8 = vmul.f32 %v520_v6, %v250_v7 }
 0x194   :  { %139 = vadd.xlane.f32.xlu0 %v132_v55 }
 0x19c   :  { %172 = vadd.xlane.f32.xlu0 %v170_v57 }
 0x1a4   :  { %193 = vmax.xlane.f32.xlu0 %v656_v58 }
 0x1ab   :  { %v138_v60 = vpop.xlane.xlu1 %137 }
 0x1ac   :  { %v141_v62 = vadd.f32 %v138_v60, %v135_v59  ;;  %239 = vmax.xlane.f32.xlu0 %v661_v61 }
 0x1ae   :  { %144 = vst.msk [vmem:[#allocation7] sm:$0xff] %vm38_vm1, %v141_v62 }
 0x1b5   :  { %v432_v21 = vld [vmem:[#allocation7] sm:$0xff] }
 0x1b6   :  { %v434_v26 = vsel %vm38_vm1, %v432_v21, 0.0 }
 0x1f7   :  { %v225_v4 = vpop.xlane.xlu2 %224 }
 0x1f8   :  { %v228_v5 = vadd.f32 %v225_v4, %v206_v3 }
 0x1fa   :  { %230 = vst.msk [vmem:[#allocation3] sm:$0xff] %vm38_vm1, %v228_v5 }
 0x1ff   :  { %v271_v9 = vpop.xlane.xlu0 %270 }
 0x200   :  { %v274_v10 = vadd.f32 %v271_v9, %v252_v8 }
 0x201   :  { %v383_v12 = vld [vmem:[#allocation3] sm:$0xff] }
 0x202   :  { %276 = vst.msk [vmem:[#allocation5] sm:$0xff] %vm38_vm1, %v274_v10  ;;  %521 = vlog2.f32 %v383_v12  ;;  %v251_v10 = vld [vmem:[#allocation5 + $0x8] sm:$0xff] }
 0x207   :  { %v140_v13 = vpop.xlane.xlu0 %139 }
 0x208   :  { %v142_v14 = vadd.f32 %v140_v13, %v136_v11  ;;  %v522_v19 = vpop.eup %521  ;;  %v167_v11 = vld [vmem:[#allocation6 + $0x8] sm:$0xff] }
 0x209   :  { %v395_v15 = vld [vmem:[#allocation5] sm:$0xff]  ;;  %v386_v29 = vmul.f32 0.6931472, %v522_v19 }
 0x20a   :  { %145 = vst.msk [vmem:[#allocation7 + $0x8] sm:$0xff] %vm38_vm1, %v142_v14  ;;  %523 = vlog2.f32 %v395_v15 }
 0x20b   :  { %v389_v35 = vadd.f32 %v386_v29, %v380_v34 }
 0x20f   :  { %v173_v20 = vpop.xlane.xlu0 %172 }
 0x210   :  { %v524_v22 = vpop.eup %523  ;;  %v176_v23 = vadd.f32 %v173_v20, %v166_v17  ;;  %v205_v17 = vld [vmem:[#allocation3 + $0x8] sm:$0xff] }
 0x211   :  { %v433_v24 = vld [vmem:[#allocation7 + $0x8] sm:$0xff]  ;;  %v398_v25 = vmul.f32 0.6931472, %v524_v22 }
 0x212   :  { %178 = vst.msk [vmem:[#allocation6] sm:$0xff] %vm38_vm1, %v176_v23  ;;  %v435_v28 = vsel %vm38_vm1, %v433_v24, 0.0 }
 0x213   :  { %v436_v30 = vadd.f32 %v435_v28, %v434_v26  ;;  %v401_v32 = vadd.f32 %v398_v25, %v392_v31 }
 0x215   :  { %437 = vadd.xlane.f32.xlu0 %v436_v30  ;;  %v403_v38 = vadd.f32 %v401_v32, %v389_v35 }
 0x217   :  { %v194_v36 = vpop.xlane.xlu0 %193 }
 0x218   :  { %v674_v37 = vmax.f32 %v671_v33, %v194_v36 }
 0x219   :  { %v405_v39 = vld [vmem:[#allocation6] sm:$0xff] }
 0x21a   :  { %v198_v40 = vsub.f32 %v671_v33, %v674_v37  ;;  %233 = vst.msk [vmem:[#allocation2 + $0x8] sm:$0xff] %vm38_vm1, %v674_v37  ;;  %v407_v41 = vsub.f32 %v403_v38, %v405_v39 }
 0x21c   :  { %v419_v42 = vsel %vm38_vm1, %v407_v41, 0.0 }
 0x21d   :  { %422 = vadd.xlane.f32.xlu2 %v419_v42 }
 0x21f   :  { %v240_v44 = vpop.xlane.xlu0 %239 }
 0x220   :  { %v242_v45 = vmax.f32 %v236_v43, %v240_v44 }
 0x222   :  { %v244_v46 = vsub.f32 %v236_v43, %v242_v45  ;;  %279 = vst.msk [vmem:[#allocation4 + $0x8] sm:$0xff] %vm38_vm1, %v242_v45  ;;  %261 = vperm.xlu1 %510, %v242_v45  }
 0x229   :  { %157 = vperm.xlu0 %512, %v152_v47  }
 0x235   :  { %215 = vperm.xlu2 %511, %v674_v37  }
 0x288   :  { %v438_v48 = vpop.xlane.xlu0 %437 }
 0x289   :  { %v439_v49 = vrot.slane %v438_v48, 4 }
 0x28b   :  { %v440_v50 = vadd.f32 %v439_v49, %v438_v48 }
 0x28d   :  { %v441_v51 = vrot.slane %v440_v50, 2 }
 0x28f   :  { %v442_v56 = vadd.f32 %v441_v51, %v440_v50 }
 0x290   :  { %v423_v52 = vpop.xlane.xlu2 %422 }
 0x291   :  { %v424_v53 = vrot.slane %v423_v52, 4  ;;  %v443_v0 = vrot.slane %v442_v56, 1 }
 0x293   :  { %v425_v54 = vadd.f32 %v424_v53, %v423_v52  ;;  %v444_v6 = vadd.f32 %v443_v0, %v442_v56 }
 0x294   :  { %v262_v55 = vpop.permute.xlu1 %261 }
 0x295   :  { %v426_v57 = vrot.slane %v425_v54, 2  ;;  %v265_v59 = vsub.f32 %v661_v61, %v262_v55 }
 0x297   :  { %v268_v60 = vmul.f32 1.442695, %v265_v59  ;;  %v427_v62 = vadd.f32 %v426_v57, %v425_v54 }
 0x298   :  { %v216_v63 = vpop.permute.xlu2 %215 }
 0x299   :  { %525 = vpow2.f32 %v268_v60  ;;  %v219_v1 = vsub.f32 %v656_v58, %v216_v63  ;;  %v428_v2 = vrot.slane %v427_v62, 1 }
 0x29b   :  { %v222_v3 = vmul.f32 1.442695, %v219_v1  ;;  %v158_v4 = vpop.permute.xlu0 %157  ;;  %v429_v5 = vadd.f32 %v428_v2, %v427_v62 }
 0x29c   :  { %vm160_vm6 = vcmp.eq.s32.totalorder %v641_v18, %v158_v4  ;;  %v247_v18 = vmul.f32 1.442695, %v244_v46 }
 0x29d   :  { %527 = vpow2.f32 %v222_v3  ;;  %v493_v7 = vsel %vm160_vm6, 1.0, %v590_v16  ;;  %499 = vpush %v429_v5 }
 0x29e   :  { %501 = vpush %v444_v6  ;;  %v171_v61 = vmul.f32 %v493_v7, %v648_v27  ;;  %v201_v27 = vmul.f32 1.442695, %v198_v40  ;;  %529 = vpow2.f32 %v247_v18 }
 0x29f   :  { %v526_v8 = vpop.eup %525 }
 0x2a0   :  { %272 = vadd.xlane.f32.xlu0 %v526_v8  ;;  %174 = vadd.xlane.f32.xlu2 %v171_v61  ;;  %531 = vpow2.f32 %v201_v27 }
 0x2a3   :  { %v528_v9 = vpop.eup %527 }
 0x2a4   :  { %226 = vadd.xlane.f32.xlu1 %v528_v9  ;;  %v530_v58 = vpop.eup %529 }
 0x2a5   :  { %v253_v12 = vmul.f32 %v530_v58, %v251_v10 }
 0x2a6   :  { %v532_v13 = vpop.eup %531 }
 0x2a7   :  { %v207_v21 = vmul.f32 %v532_v13, %v205_v17 }
 0x2ce   :  { %s500_s2 = spop %499 }
 0x2cf   :  { %s502_s23 = spop %501  ;;  %s431_s25 = smul.f32 0.125, %s500_s2 }
 0x2d0   :  { %s446_s24 = smul.f32 0.5, %s502_s23 }
 0x2d2   :  { %s447_s28 = smul.f32 0.0078125, %s446_s24 }
 0x2d4   :  { %s448_s5 = sadd.f32 %s447_s28, %s431_s25 }
 0x2d6   :  { %v449_v16 = vstv %s448_s5 }
 0x2d7   :  { %450 = vst [vmem:[#allocation11] sm:$0xff] %v449_v16 }
 0x2d8   :  { %461 = dma.vmem_to_hbm [thread:$0]  %s457_s27, 128, %s459_s4, [#allocation10]  }
 0x313   :  { %v273_v14 = vpop.xlane.xlu0 %272  ;;  %v175_v15 = vpop.xlane.xlu2 %174 }
 0x314   :  { %v275_v19 = vadd.f32 %v273_v14, %v253_v12  ;;  %v177_v20 = vadd.f32 %v175_v15, %v167_v11 }
 0x316   :  { %277 = vst.msk [vmem:[#allocation5 + $0x8] sm:$0xff] %vm38_vm1, %v275_v19 }
 0x317   :  { %179 = vst.msk [vmem:[#allocation6 + $0x8] sm:$0xff] %vm38_vm1, %v177_v20  ;;  %v227_v22 = vpop.xlane.xlu1 %226 }
 0x318   :  { %v229_v23 = vadd.f32 %v227_v22, %v207_v21 }
 0x31a   :  { %231 = vst.msk [vmem:[#allocation3 + $0x8] sm:$0xff] %vm38_vm1, %v229_v23 }
 0x31b   :  { %583 = dma.done.wait [#allocation10], 128  }
 0x31c   :  { %584 = vsyncadd [#allocation10], 4294967168 }
 0x31d   :  { %466 = vsyncpa [#allocation9], 1 }
 0x31e   :  { %467 = vsyncpa [#allocation10], 1 }

</bundles_post_ra>
